<compile_context>
chip_gen: v7x
topology: tpu7x:2x2x1
jax: 0.10.0
libtpu: 0.0.40
codegen_flags: <defaults>
</compile_context>

<pallas_src>
import functools

import numpy as np
import jax
import jax.numpy as jnp
from jax import lax
from jax.experimental import pallas as pl
from jax.experimental.pallas import tpu as pltpu


def lstm_fc_logsoftmax_kernel(ids_ref, len_ref, gtab_ref, whh_ref,
                              wfc_ref, bfc_ref, out_ref, *, T, Bp):
    """ids:(T*Bp,1) i32 (time-major)   len:(Bp,1) i32
       gtab:(Vp,4H) bf16  (= emb @ W_ih + b, bias folded in)
       whh:(H,4H) bf16    wfc:(H,Op) bf16   bfc:(1,Op) f32   out:(Bp,Op) f32."""
    Vp, G = gtab_ref.shape                      # G = 4H
    H = whh_ref.shape[0]

    # --- Embedding + input projection as ONE exact one-hot matmul (MXU). -----
    ids = ids_ref[...]                                            # (T*Bp, 1)
    vocab_iota = lax.broadcasted_iota(jnp.int32, (T * Bp, Vp), 1)
    onehot = (ids == vocab_iota).astype(jnp.bfloat16)             # (T*Bp, Vp)
    xg_all = jnp.dot(onehot, gtab_ref[...],
                     preferred_element_type=jnp.float32)          # (T*Bp, 4H)
    xg_all = xg_all.reshape(T, Bp, G)                             # sublane split

    # --- Hoist loop invariants out of the recurrence. -------------------------
    whh = whh_ref[...]                                            # (H, 4H) bf16
    lens = len_ref[...]                                           # (Bp, 1) i32
    t_iota = lax.broadcasted_iota(jnp.int32, (T, Bp, 1), 0)
    keep_all = lens[None, :, :] > t_iota                          # (T, Bp, 1)

    h = jnp.zeros((Bp, H), jnp.float32)
    c = jnp.zeros((Bp, H), jnp.float32)

    # Statically unrolled recurrence: only the (Bp,H)x(H,4H) dot per step.
    for t in range(T):
        gates = xg_all[t] + jnp.dot(h.astype(jnp.bfloat16), whh,
                                    preferred_element_type=jnp.float32)
        sig = jax.nn.sigmoid(gates)          # full-vreg EUP pass
        th = jnp.tanh(gates)                 # full-vreg EUP pass
        i_g = sig[:, 0 * H:1 * H]
        f_g = sig[:, 1 * H:2 * H]
        g_g = th[:, 2 * H:3 * H]
        o_g = sig[:, 3 * H:4 * H]
        c_new = f_g * c + i_g * g_g
        h_new = o_g * jnp.tanh(c_new)
        # packed-sequence semantics: freeze state past each sequence's length.
        keep = keep_all[t]
        h = jnp.where(keep, h_new, h)
        c = jnp.where(keep, c_new, c)

    # fc_out(hidden) + LogSoftmax(dim=1); padded lanes carry bias -1e9 -> exp()
    # underflows to 0, so the softmax over Op lanes equals the O-lane softmax.
    logits = (jnp.dot(h.astype(jnp.bfloat16), wfc_ref[...],
                      preferred_element_type=jnp.float32)
              + bfc_ref[...])                                     # (Bp, Op) f32
    m = jnp.max(logits, axis=-1, keepdims=True)
    z = logits - m
    out_ref[...] = z - jnp.log(jnp.sum(jnp.exp(z), axis=-1, keepdims=True))


def init_params(key, vocab_size, emb_dim, hidden_dim, output_dim):
    ks = jax.random.split(key, 6)
    emb = 0.1 * jax.random.normal(ks[0], (vocab_size, emb_dim), jnp.float32)
    emb = emb.at[0].set(0.0)  # padding_idx=0
    # Fused LSTM weights, gate order (i, f, g, o), laid out for right-multiply.
    wih = 0.1 * jax.random.normal(ks[1], (emb_dim, 4 * hidden_dim), jnp.float32)
    whh = 0.1 * jax.random.normal(ks[2], (hidden_dim, 4 * hidden_dim), jnp.float32)
    b_ih = 0.1 * jax.random.normal(ks[3], (4 * hidden_dim,), jnp.float32)
    b_hh = 0.1 * jax.random.normal(ks[4], (4 * hidden_dim,), jnp.float32)
    wfc = 0.1 * jax.random.normal(ks[5], (hidden_dim, output_dim), jnp.float32)
    bfc = jnp.zeros((output_dim,), jnp.float32)
    return {
        "emb": emb,                                        # (V, E)
        "wih": wih,                                        # (E, 4H)
        "whh": whh,                                        # (H, 4H)
        "b": (b_ih + b_hh).reshape(1, 4 * hidden_dim),     # (1, 4H)
        "wfc": wfc,                                        # (H, O)
        "bfc": bfc.reshape(1, output_dim),                 # (1, O)
    }


def net_forward(xs, lengths, params):
    """xs: (B, T) int32 token ids (0 = padding), lengths: (B,) int32."""
    B, T = xs.shape
    V = params["emb"].shape[0]
    H = params["whh"].shape[0]
    O = params["wfc"].shape[1]

    # Pad batch to a full sublane (8), output to a full lane (128), vocab to 8.
    Bp = max(8, ((B + 7) // 8) * 8)
    Op = max(128, ((O + 127) // 128) * 128)
    Vp = max(8, ((V + 7) // 8) * 8)

    # Fold Embedding + input projection + bias into one (Vp, 4H) gate table.
    # (Constant w.r.t. the inputs; under jit this folds into the params prep.)
    gtab = jnp.dot(params["emb"], params["wih"]) + params["b"]        # (V, 4H)
    gtab = jnp.zeros((Vp, 4 * H), jnp.float32).at[:V].set(gtab)
    gtab = gtab.astype(jnp.bfloat16)

    # Time-major token ids, padded batch rows use token 0 (padding_idx).
    xs_p = jnp.zeros((Bp, T), jnp.int32).at[:B].set(xs.astype(jnp.int32))
    ids = jnp.transpose(xs_p, (1, 0)).reshape(T * Bp, 1)
    len_p = jnp.zeros((Bp, 1), jnp.int32).at[:B, 0].set(lengths.astype(jnp.int32))

    whh = params["whh"].astype(jnp.bfloat16)
    wfc = jnp.zeros((H, Op), jnp.float32).at[:, :O].set(params["wfc"]).astype(jnp.bfloat16)
    bfc = jnp.full((1, Op), -1e9, jnp.float32).at[:, :O].set(params["bfc"])

    vmem = pl.BlockSpec(memory_space=pltpu.MemorySpace.VMEM)
    kernel = functools.partial(lstm_fc_logsoftmax_kernel, T=T, Bp=Bp)
    out = pl.pallas_call(
        kernel,
        out_shape=jax.ShapeDtypeStruct((Bp, Op), jnp.float32),
        in_specs=[vmem] * 6,
        out_specs=vmem,
    )(ids, len_p, gtab, whh, wfc, bfc)
    return out[:B, :O]


def reference(xs, lengths, params):
    """Pure-JAX reference matching PyTorch packed-LSTM semantics
       (mirrors the kernel's bf16-operand / f32-accumulate matmuls and the
        folded bf16 gate table)."""
    B, T = xs.shape
    H = params["whh"].shape[0]
    # Same folded (V,4H) gate table, same bf16 quantization as the kernel.
    gtab = (jnp.dot(params["emb"], params["wih"]) + params["b"]).astype(jnp.bfloat16)
    xg = jnp.take(gtab, xs, axis=0).astype(jnp.float32)          # (B, T, 4H)
    whh = params["whh"].astype(jnp.bfloat16)
    wfc = params["wfc"].astype(jnp.bfloat16)
    h = jnp.zeros((B, H), jnp.float32)
    c = jnp.zeros((B, H), jnp.float32)
    for t in range(T):
        gates = xg[:, t, :] + jnp.dot(h.astype(jnp.bfloat16), whh,
                                      preferred_element_type=jnp.float32)
        i_g = jax.nn.sigmoid(gates[:, 0 * H:1 * H])
        f_g = jax.nn.sigmoid(gates[:, 1 * H:2 * H])
        g_g = jnp.tanh(gates[:, 2 * H:3 * H])
        o_g = jax.nn.sigmoid(gates[:, 3 * H:4 * H])
        c_new = f_g * c + i_g * g_g
        h_new = o_g * jnp.tanh(c_new)
        keep = (lengths > t)[:, None]
        h = jnp.where(keep, h_new, h)
        c = jnp.where(keep, c_new, c)
    logits = (jnp.dot(h.astype(jnp.bfloat16), wfc,
                      preferred_element_type=jnp.float32) + params["bfc"])
    m = jnp.max(logits, axis=-1, keepdims=True)
    z = logits - m
    return z - jnp.log(jnp.sum(jnp.exp(z), axis=-1, keepdims=True))


if __name__ == "__main__":
    V, E, H, O = 20, 16, 32, 8     # vocab_size, emb_dim, hidden_dim, output_dim
    B, T = 4, 8                    # batch, max sequence length

    key = jax.random.PRNGKey(0)
    pkey, xkey = jax.random.split(key)
    params = init_params(pkey, V, E, H, O)

    lengths = jnp.array([8, 5, 3, 6], dtype=jnp.int32)
    xs = jax.random.randint(xkey, (B, T), 1, V, dtype=jnp.int32)
    tpos = jnp.arange(T)[None, :]
    xs = jnp.where(tpos < lengths[:, None], xs, 0)   # pad with token 0 (padding_idx)

    out = jax.block_until_ready(net_forward(xs, lengths, params))
    ref = reference(xs, lengths, params)
    np.testing.assert_allclose(np.asarray(out), np.asarray(ref), rtol=1e-3, atol=1e-3)
    print("KERNEL_OK")
</pallas_src>

<mosaic_0001>
module attributes {stable_mosaic.version = 11 : i64} {
  func.func @lstm_fc_logsoftmax_kernel(%arg0: memref<64x1xi32, #tpu.memory_space<vmem>>, %arg1: memref<8x1xi32, #tpu.memory_space<vmem>>, %arg2: memref<24x128xbf16, #tpu.memory_space<vmem>>, %arg3: memref<32x128xbf16, #tpu.memory_space<vmem>>, %arg4: memref<32x128xbf16, #tpu.memory_space<vmem>>, %arg5: memref<1x128xf32, #tpu.memory_space<vmem>>, %arg6: memref<8x128xf32, #tpu.memory_space<vmem>>) attributes {dimension_semantics = [], scalar_prefetch = 0 : i64, scratch_operands = 0 : i64, tpu.core_type = #tpu.core_type<tc>} {
    %c0 = arith.constant 0 : index
    %c0_0 = arith.constant 0 : index
    %0 = vector.load %arg0[%c0, %c0_0] : memref<64x1xi32, #tpu.memory_space<vmem>>, vector<64x1xi32>
    %1 = tpu.iota {dimensions = array<i32: 1>} : vector<64x24xi32>
    %2 = vector.broadcast %0 : vector<64x1xi32> to vector<64x24xi32>
    %3 = arith.cmpi eq, %2, %1 : vector<64x24xi32>
    %4 = arith.extui %3 : vector<64x24xi1> to vector<64x24xi32>
    %5 = arith.sitofp %4 : vector<64x24xi32> to vector<64x24xf32>
    %6 = arith.truncf %5 : vector<64x24xf32> to vector<64x24xbf16>
    %c0_1 = arith.constant 0 : index
    %c0_2 = arith.constant 0 : index
    %7 = vector.load %arg2[%c0_1, %c0_2] : memref<24x128xbf16, #tpu.memory_space<vmem>>, vector<24x128xbf16>
    %cst = arith.constant dense<0.000000e+00> : vector<64x128xf32>
    %8 = tpu.matmul %6, %7, %cst {dimension_numbers = #tpu.dot_dimension_numbers<[1], [0], [0], [1], [0, 0, 1, 1], [], []>} : vector<64x24xbf16>, vector<24x128xbf16>, vector<64x128xf32> -> vector<64x128xf32>
    %9 = vector.shape_cast %8 : vector<64x128xf32> to vector<8x8x128xf32>
    %c0_3 = arith.constant 0 : index
    %c0_4 = arith.constant 0 : index
    %10 = vector.load %arg3[%c0_3, %c0_4] : memref<32x128xbf16, #tpu.memory_space<vmem>>, vector<32x128xbf16>
    %c0_5 = arith.constant 0 : index
    %c0_6 = arith.constant 0 : index
    %11 = vector.load %arg1[%c0_5, %c0_6] : memref<8x1xi32, #tpu.memory_space<vmem>>, vector<8x1xi32>
    %12 = tpu.iota {dimensions = array<i32: 0>} : vector<8x8x1xi32>
    %13 = vector.shape_cast %11 : vector<8x1xi32> to vector<1x8x1xi32>
    %14 = vector.broadcast %13 : vector<1x8x1xi32> to vector<8x8x1xi32>
    %15 = arith.cmpi sgt, %14, %12 : vector<8x8x1xi32>
    %cst_7 = arith.constant 0.000000e+00 : f32
    %16 = vector.broadcast %cst_7 : f32 to vector<8x32xf32>
    %cst_8 = arith.constant 0.000000e+00 : f32
    %17 = vector.broadcast %cst_8 : f32 to vector<8x32xf32>
    %18 = vector.extract_strided_slice %9 {offsets = [0, 0, 0], sizes = [1, 8, 128], strides = [1, 1, 1]} : vector<8x8x128xf32> to vector<1x8x128xf32>
    %19 = vector.shape_cast %18 : vector<1x8x128xf32> to vector<8x128xf32>
    %20 = arith.truncf %16 : vector<8x32xf32> to vector<8x32xbf16>
    %cst_9 = arith.constant dense<0.000000e+00> : vector<8x128xf32>
    %21 = tpu.matmul %20, %10, %cst_9 {dimension_numbers = #tpu.dot_dimension_numbers<[1], [0], [0], [1], [0, 0, 1, 1], [], []>} : vector<8x32xbf16>, vector<32x128xbf16>, vector<8x128xf32> -> vector<8x128xf32>
    %22 = arith.addf %19, %21 : vector<8x128xf32>
    %23 = arith.negf %22 : vector<8x128xf32>
    %24 = math.exp %23 : vector<8x128xf32>
    %cst_10 = arith.constant 1.000000e+00 : f32
    %25 = vector.broadcast %cst_10 : f32 to vector<8x128xf32>
    %26 = arith.addf %25, %24 : vector<8x128xf32>
    %27 = arith.divf %25, %26 : vector<8x128xf32>
    %28 = math.tanh %22 : vector<8x128xf32>
    %29 = vector.extract_strided_slice %27 {offsets = [0, 0], sizes = [8, 32], strides = [1, 1]} : vector<8x128xf32> to vector<8x32xf32>
    %30 = vector.extract_strided_slice %27 {offsets = [0, 32], sizes = [8, 32], strides = [1, 1]} : vector<8x128xf32> to vector<8x32xf32>
    %31 = vector.extract_strided_slice %28 {offsets = [0, 64], sizes = [8, 32], strides = [1, 1]} : vector<8x128xf32> to vector<8x32xf32>
    %32 = vector.extract_strided_slice %27 {offsets = [0, 96], sizes = [8, 32], strides = [1, 1]} : vector<8x128xf32> to vector<8x32xf32>
    %33 = arith.mulf %30, %17 : vector<8x32xf32>
    %34 = arith.mulf %29, %31 : vector<8x32xf32>
    %35 = arith.addf %33, %34 : vector<8x32xf32>
    %36 = math.tanh %35 : vector<8x32xf32>
    %37 = arith.mulf %32, %36 : vector<8x32xf32>
    %38 = vector.extract_strided_slice %15 {offsets = [0, 0, 0], sizes = [1, 8, 1], strides = [1, 1, 1]} : vector<8x8x1xi1> to vector<1x8x1xi1>
    %39 = vector.shape_cast %38 : vector<1x8x1xi1> to vector<8x1xi1>
    %40 = vector.shape_cast %39 : vector<8x1xi1> to vector<8x1xi1>
    %41 = vector.broadcast %40 : vector<8x1xi1> to vector<8x32xi1>
    %42 = arith.select %41, %37, %16 : vector<8x32xi1>, vector<8x32xf32>
    %43 = vector.shape_cast %39 : vector<8x1xi1> to vector<8x1xi1>
    %44 = vector.broadcast %43 : vector<8x1xi1> to vector<8x32xi1>
    %45 = arith.select %44, %35, %17 : vector<8x32xi1>, vector<8x32xf32>
    %46 = vector.extract_strided_slice %9 {offsets = [1, 0, 0], sizes = [1, 8, 128], strides = [1, 1, 1]} : vector<8x8x128xf32> to vector<1x8x128xf32>
    %47 = vector.shape_cast %46 : vector<1x8x128xf32> to vector<8x128xf32>
    %48 = arith.truncf %42 : vector<8x32xf32> to vector<8x32xbf16>
    %cst_11 = arith.constant dense<0.000000e+00> : vector<8x128xf32>
    %49 = tpu.matmul %48, %10, %cst_11 {dimension_numbers = #tpu.dot_dimension_numbers<[1], [0], [0], [1], [0, 0, 1, 1], [], []>} : vector<8x32xbf16>, vector<32x128xbf16>, vector<8x128xf32> -> vector<8x128xf32>
    %50 = arith.addf %47, %49 : vector<8x128xf32>
    %51 = arith.negf %50 : vector<8x128xf32>
    %52 = math.exp %51 : vector<8x128xf32>
    %cst_12 = arith.constant 1.000000e+00 : f32
    %53 = vector.broadcast %cst_12 : f32 to vector<8x128xf32>
    %54 = arith.addf %53, %52 : vector<8x128xf32>
    %55 = arith.divf %53, %54 : vector<8x128xf32>
    %56 = math.tanh %50 : vector<8x128xf32>
    %57 = vector.extract_strided_slice %55 {offsets = [0, 0], sizes = [8, 32], strides = [1, 1]} : vector<8x128xf32> to vector<8x32xf32>
    %58 = vector.extract_strided_slice %55 {offsets = [0, 32], sizes = [8, 32], strides = [1, 1]} : vector<8x128xf32> to vector<8x32xf32>
    %59 = vector.extract_strided_slice %56 {offsets = [0, 64], sizes = [8, 32], strides = [1, 1]} : vector<8x128xf32> to vector<8x32xf32>
    %60 = vector.extract_strided_slice %55 {offsets = [0, 96], sizes = [8, 32], strides = [1, 1]} : vector<8x128xf32> to vector<8x32xf32>
    %61 = arith.mulf %58, %45 : vector<8x32xf32>
    %62 = arith.mulf %57, %59 : vector<8x32xf32>
    %63 = arith.addf %61, %62 : vector<8x32xf32>
    %64 = math.tanh %63 : vector<8x32xf32>
    %65 = arith.mulf %60, %64 : vector<8x32xf32>
    %66 = vector.extract_strided_slice %15 {offsets = [1, 0, 0], sizes = [1, 8, 1], strides = [1, 1, 1]} : vector<8x8x1xi1> to vector<1x8x1xi1>
    %67 = vector.shape_cast %66 : vector<1x8x1xi1> to vector<8x1xi1>
    %68 = vector.shape_cast %67 : vector<8x1xi1> to vector<8x1xi1>
    %69 = vector.broadcast %68 : vector<8x1xi1> to vector<8x32xi1>
    %70 = arith.select %69, %65, %42 : vector<8x32xi1>, vector<8x32xf32>
    %71 = vector.shape_cast %67 : vector<8x1xi1> to vector<8x1xi1>
    %72 = vector.broadcast %71 : vector<8x1xi1> to vector<8x32xi1>
    %73 = arith.select %72, %63, %45 : vector<8x32xi1>, vector<8x32xf32>
    %74 = vector.extract_strided_slice %9 {offsets = [2, 0, 0], sizes = [1, 8, 128], strides = [1, 1, 1]} : vector<8x8x128xf32> to vector<1x8x128xf32>
    %75 = vector.shape_cast %74 : vector<1x8x128xf32> to vector<8x128xf32>
    %76 = arith.truncf %70 : vector<8x32xf32> to vector<8x32xbf16>
    %cst_13 = arith.constant dense<0.000000e+00> : vector<8x128xf32>
    %77 = tpu.matmul %76, %10, %cst_13 {dimension_numbers = #tpu.dot_dimension_numbers<[1], [0], [0], [1], [0, 0, 1, 1], [], []>} : vector<8x32xbf16>, vector<32x128xbf16>, vector<8x128xf32> -> vector<8x128xf32>
    %78 = arith.addf %75, %77 : vector<8x128xf32>
    %79 = arith.negf %78 : vector<8x128xf32>
    %80 = math.exp %79 : vector<8x128xf32>
    %cst_14 = arith.constant 1.000000e+00 : f32
    %81 = vector.broadcast %cst_14 : f32 to vector<8x128xf32>
    %82 = arith.addf %81, %80 : vector<8x128xf32>
    %83 = arith.divf %81, %82 : vector<8x128xf32>
    %84 = math.tanh %78 : vector<8x128xf32>
    %85 = vector.extract_strided_slice %83 {offsets = [0, 0], sizes = [8, 32], strides = [1, 1]} : vector<8x128xf32> to vector<8x32xf32>
    %86 = vector.extract_strided_slice %83 {offsets = [0, 32], sizes = [8, 32], strides = [1, 1]} : vector<8x128xf32> to vector<8x32xf32>
    %87 = vector.extract_strided_slice %84 {offsets = [0, 64], sizes = [8, 32], strides = [1, 1]} : vector<8x128xf32> to vector<8x32xf32>
    %88 = vector.extract_strided_slice %83 {offsets = [0, 96], sizes = [8, 32], strides = [1, 1]} : vector<8x128xf32> to vector<8x32xf32>
    %89 = arith.mulf %86, %73 : vector<8x32xf32>
    %90 = arith.mulf %85, %87 : vector<8x32xf32>
    %91 = arith.addf %89, %90 : vector<8x32xf32>
    %92 = math.tanh %91 : vector<8x32xf32>
    %93 = arith.mulf %88, %92 : vector<8x32xf32>
    %94 = vector.extract_strided_slice %15 {offsets = [2, 0, 0], sizes = [1, 8, 1], strides = [1, 1, 1]} : vector<8x8x1xi1> to vector<1x8x1xi1>
    %95 = vector.shape_cast %94 : vector<1x8x1xi1> to vector<8x1xi1>
    %96 = vector.shape_cast %95 : vector<8x1xi1> to vector<8x1xi1>
    %97 = vector.broadcast %96 : vector<8x1xi1> to vector<8x32xi1>
    %98 = arith.select %97, %93, %70 : vector<8x32xi1>, vector<8x32xf32>
    %99 = vector.shape_cast %95 : vector<8x1xi1> to vector<8x1xi1>
    %100 = vector.broadcast %99 : vector<8x1xi1> to vector<8x32xi1>
    %101 = arith.select %100, %91, %73 : vector<8x32xi1>, vector<8x32xf32>
    %102 = vector.extract_strided_slice %9 {offsets = [3, 0, 0], sizes = [1, 8, 128], strides = [1, 1, 1]} : vector<8x8x128xf32> to vector<1x8x128xf32>
    %103 = vector.shape_cast %102 : vector<1x8x128xf32> to vector<8x128xf32>
    %104 = arith.truncf %98 : vector<8x32xf32> to vector<8x32xbf16>
    %cst_15 = arith.constant dense<0.000000e+00> : vector<8x128xf32>
    %105 = tpu.matmul %104, %10, %cst_15 {dimension_numbers = #tpu.dot_dimension_numbers<[1], [0], [0], [1], [0, 0, 1, 1], [], []>} : vector<8x32xbf16>, vector<32x128xbf16>, vector<8x128xf32> -> vector<8x128xf32>
    %106 = arith.addf %103, %105 : vector<8x128xf32>
    %107 = arith.negf %106 : vector<8x128xf32>
    %108 = math.exp %107 : vector<8x128xf32>
    %cst_16 = arith.constant 1.000000e+00 : f32
    %109 = vector.broadcast %cst_16 : f32 to vector<8x128xf32>
    %110 = arith.addf %109, %108 : vector<8x128xf32>
    %111 = arith.divf %109, %110 : vector<8x128xf32>
    %112 = math.tanh %106 : vector<8x128xf32>
    %113 = vector.extract_strided_slice %111 {offsets = [0, 0], sizes = [8, 32], strides = [1, 1]} : vector<8x128xf32> to vector<8x32xf32>
    %114 = vector.extract_strided_slice %111 {offsets = [0, 32], sizes = [8, 32], strides = [1, 1]} : vector<8x128xf32> to vector<8x32xf32>
    %115 = vector.extract_strided_slice %112 {offsets = [0, 64], sizes = [8, 32], strides = [1, 1]} : vector<8x128xf32> to vector<8x32xf32>
    %116 = vector.extract_strided_slice %111 {offsets = [0, 96], sizes = [8, 32], strides = [1, 1]} : vector<8x128xf32> to vector<8x32xf32>
    %117 = arith.mulf %114, %101 : vector<8x32xf32>
    %118 = arith.mulf %113, %115 : vector<8x32xf32>
    %119 = arith.addf %117, %118 : vector<8x32xf32>
    %120 = math.tanh %119 : vector<8x32xf32>
    %121 = arith.mulf %116, %120 : vector<8x32xf32>
    %122 = vector.extract_strided_slice %15 {offsets = [3, 0, 0], sizes = [1, 8, 1], strides = [1, 1, 1]} : vector<8x8x1xi1> to vector<1x8x1xi1>
    %123 = vector.shape_cast %122 : vector<1x8x1xi1> to vector<8x1xi1>
    %124 = vector.shape_cast %123 : vector<8x1xi1> to vector<8x1xi1>
    %125 = vector.broadcast %124 : vector<8x1xi1> to vector<8x32xi1>
    %126 = arith.select %125, %121, %98 : vector<8x32xi1>, vector<8x32xf32>
    %127 = vector.shape_cast %123 : vector<8x1xi1> to vector<8x1xi1>
    %128 = vector.broadcast %127 : vector<8x1xi1> to vector<8x32xi1>
    %129 = arith.select %128, %119, %101 : vector<8x32xi1>, vector<8x32xf32>
    %130 = vector.extract_strided_slice %9 {offsets = [4, 0, 0], sizes = [1, 8, 128], strides = [1, 1, 1]} : vector<8x8x128xf32> to vector<1x8x128xf32>
    %131 = vector.shape_cast %130 : vector<1x8x128xf32> to vector<8x128xf32>
    %132 = arith.truncf %126 : vector<8x32xf32> to vector<8x32xbf16>
    %cst_17 = arith.constant dense<0.000000e+00> : vector<8x128xf32>
    %133 = tpu.matmul %132, %10, %cst_17 {dimension_numbers = #tpu.dot_dimension_numbers<[1], [0], [0], [1], [0, 0, 1, 1], [], []>} : vector<8x32xbf16>, vector<32x128xbf16>, vector<8x128xf32> -> vector<8x128xf32>
    %134 = arith.addf %131, %133 : vector<8x128xf32>
    %135 = arith.negf %134 : vector<8x128xf32>
    %136 = math.exp %135 : vector<8x128xf32>
    %cst_18 = arith.constant 1.000000e+00 : f32
    %137 = vector.broadcast %cst_18 : f32 to vector<8x128xf32>
    %138 = arith.addf %137, %136 : vector<8x128xf32>
    %139 = arith.divf %137, %138 : vector<8x128xf32>
    %140 = math.tanh %134 : vector<8x128xf32>
    %141 = vector.extract_strided_slice %139 {offsets = [0, 0], sizes = [8, 32], strides = [1, 1]} : vector<8x128xf32> to vector<8x32xf32>
    %142 = vector.extract_strided_slice %139 {offsets = [0, 32], sizes = [8, 32], strides = [1, 1]} : vector<8x128xf32> to vector<8x32xf32>
    %143 = vector.extract_strided_slice %140 {offsets = [0, 64], sizes = [8, 32], strides = [1, 1]} : vector<8x128xf32> to vector<8x32xf32>
    %144 = vector.extract_strided_slice %139 {offsets = [0, 96], sizes = [8, 32], strides = [1, 1]} : vector<8x128xf32> to vector<8x32xf32>
    %145 = arith.mulf %142, %129 : vector<8x32xf32>
    %146 = arith.mulf %141, %143 : vector<8x32xf32>
    %147 = arith.addf %145, %146 : vector<8x32xf32>
    %148 = math.tanh %147 : vector<8x32xf32>
    %149 = arith.mulf %144, %148 : vector<8x32xf32>
    %150 = vector.extract_strided_slice %15 {offsets = [4, 0, 0], sizes = [1, 8, 1], strides = [1, 1, 1]} : vector<8x8x1xi1> to vector<1x8x1xi1>
    %151 = vector.shape_cast %150 : vector<1x8x1xi1> to vector<8x1xi1>
    %152 = vector.shape_cast %151 : vector<8x1xi1> to vector<8x1xi1>
    %153 = vector.broadcast %152 : vector<8x1xi1> to vector<8x32xi1>
    %154 = arith.select %153, %149, %126 : vector<8x32xi1>, vector<8x32xf32>
    %155 = vector.shape_cast %151 : vector<8x1xi1> to vector<8x1xi1>
    %156 = vector.broadcast %155 : vector<8x1xi1> to vector<8x32xi1>
    %157 = arith.select %156, %147, %129 : vector<8x32xi1>, vector<8x32xf32>
    %158 = vector.extract_strided_slice %9 {offsets = [5, 0, 0], sizes = [1, 8, 128], strides = [1, 1, 1]} : vector<8x8x128xf32> to vector<1x8x128xf32>
    %159 = vector.shape_cast %158 : vector<1x8x128xf32> to vector<8x128xf32>
    %160 = arith.truncf %154 : vector<8x32xf32> to vector<8x32xbf16>
    %cst_19 = arith.constant dense<0.000000e+00> : vector<8x128xf32>
    %161 = tpu.matmul %160, %10, %cst_19 {dimension_numbers = #tpu.dot_dimension_numbers<[1], [0], [0], [1], [0, 0, 1, 1], [], []>} : vector<8x32xbf16>, vector<32x128xbf16>, vector<8x128xf32> -> vector<8x128xf32>
    %162 = arith.addf %159, %161 : vector<8x128xf32>
    %163 = arith.negf %162 : vector<8x128xf32>
    %164 = math.exp %163 : vector<8x128xf32>
    %cst_20 = arith.constant 1.000000e+00 : f32
    %165 = vector.broadcast %cst_20 : f32 to vector<8x128xf32>
    %166 = arith.addf %165, %164 : vector<8x128xf32>
    %167 = arith.divf %165, %166 : vector<8x128xf32>
    %168 = math.tanh %162 : vector<8x128xf32>
    %169 = vector.extract_strided_slice %167 {offsets = [0, 0], sizes = [8, 32], strides = [1, 1]} : vector<8x128xf32> to vector<8x32xf32>
    %170 = vector.extract_strided_slice %167 {offsets = [0, 32], sizes = [8, 32], strides = [1, 1]} : vector<8x128xf32> to vector<8x32xf32>
    %171 = vector.extract_strided_slice %168 {offsets = [0, 64], sizes = [8, 32], strides = [1, 1]} : vector<8x128xf32> to vector<8x32xf32>
    %172 = vector.extract_strided_slice %167 {offsets = [0, 96], sizes = [8, 32], strides = [1, 1]} : vector<8x128xf32> to vector<8x32xf32>
    %173 = arith.mulf %170, %157 : vector<8x32xf32>
    %174 = arith.mulf %169, %171 : vector<8x32xf32>
    %175 = arith.addf %173, %174 : vector<8x32xf32>
    %176 = math.tanh %175 : vector<8x32xf32>
    %177 = arith.mulf %172, %176 : vector<8x32xf32>
    %178 = vector.extract_strided_slice %15 {offsets = [5, 0, 0], sizes = [1, 8, 1], strides = [1, 1, 1]} : vector<8x8x1xi1> to vector<1x8x1xi1>
    %179 = vector.shape_cast %178 : vector<1x8x1xi1> to vector<8x1xi1>
    %180 = vector.shape_cast %179 : vector<8x1xi1> to vector<8x1xi1>
    %181 = vector.broadcast %180 : vector<8x1xi1> to vector<8x32xi1>
    %182 = arith.select %181, %177, %154 : vector<8x32xi1>, vector<8x32xf32>
    %183 = vector.shape_cast %179 : vector<8x1xi1> to vector<8x1xi1>
    %184 = vector.broadcast %183 : vector<8x1xi1> to vector<8x32xi1>
    %185 = arith.select %184, %175, %157 : vector<8x32xi1>, vector<8x32xf32>
    %186 = vector.extract_strided_slice %9 {offsets = [6, 0, 0], sizes = [1, 8, 128], strides = [1, 1, 1]} : vector<8x8x128xf32> to vector<1x8x128xf32>
    %187 = vector.shape_cast %186 : vector<1x8x128xf32> to vector<8x128xf32>
    %188 = arith.truncf %182 : vector<8x32xf32> to vector<8x32xbf16>
    %cst_21 = arith.constant dense<0.000000e+00> : vector<8x128xf32>
    %189 = tpu.matmul %188, %10, %cst_21 {dimension_numbers = #tpu.dot_dimension_numbers<[1], [0], [0], [1], [0, 0, 1, 1], [], []>} : vector<8x32xbf16>, vector<32x128xbf16>, vector<8x128xf32> -> vector<8x128xf32>
    %190 = arith.addf %187, %189 : vector<8x128xf32>
    %191 = arith.negf %190 : vector<8x128xf32>
    %192 = math.exp %191 : vector<8x128xf32>
    %cst_22 = arith.constant 1.000000e+00 : f32
    %193 = vector.broadcast %cst_22 : f32 to vector<8x128xf32>
    %194 = arith.addf %193, %192 : vector<8x128xf32>
    %195 = arith.divf %193, %194 : vector<8x128xf32>
    %196 = math.tanh %190 : vector<8x128xf32>
    %197 = vector.extract_strided_slice %195 {offsets = [0, 0], sizes = [8, 32], strides = [1, 1]} : vector<8x128xf32> to vector<8x32xf32>
    %198 = vector.extract_strided_slice %195 {offsets = [0, 32], sizes = [8, 32], strides = [1, 1]} : vector<8x128xf32> to vector<8x32xf32>
    %199 = vector.extract_strided_slice %196 {offsets = [0, 64], sizes = [8, 32], strides = [1, 1]} : vector<8x128xf32> to vector<8x32xf32>
    %200 = vector.extract_strided_slice %195 {offsets = [0, 96], sizes = [8, 32], strides = [1, 1]} : vector<8x128xf32> to vector<8x32xf32>
    %201 = arith.mulf %198, %185 : vector<8x32xf32>
    %202 = arith.mulf %197, %199 : vector<8x32xf32>
    %203 = arith.addf %201, %202 : vector<8x32xf32>
    %204 = math.tanh %203 : vector<8x32xf32>
    %205 = arith.mulf %200, %204 : vector<8x32xf32>
    %206 = vector.extract_strided_slice %15 {offsets = [6, 0, 0], sizes = [1, 8, 1], strides = [1, 1, 1]} : vector<8x8x1xi1> to vector<1x8x1xi1>
    %207 = vector.shape_cast %206 : vector<1x8x1xi1> to vector<8x1xi1>
    %208 = vector.shape_cast %207 : vector<8x1xi1> to vector<8x1xi1>
    %209 = vector.broadcast %208 : vector<8x1xi1> to vector<8x32xi1>
    %210 = arith.select %209, %205, %182 : vector<8x32xi1>, vector<8x32xf32>
    %211 = vector.shape_cast %207 : vector<8x1xi1> to vector<8x1xi1>
    %212 = vector.broadcast %211 : vector<8x1xi1> to vector<8x32xi1>
    %213 = arith.select %212, %203, %185 : vector<8x32xi1>, vector<8x32xf32>
    %214 = vector.extract_strided_slice %9 {offsets = [7, 0, 0], sizes = [1, 8, 128], strides = [1, 1, 1]} : vector<8x8x128xf32> to vector<1x8x128xf32>
    %215 = vector.shape_cast %214 : vector<1x8x128xf32> to vector<8x128xf32>
    %216 = arith.truncf %210 : vector<8x32xf32> to vector<8x32xbf16>
    %cst_23 = arith.constant dense<0.000000e+00> : vector<8x128xf32>
    %217 = tpu.matmul %216, %10, %cst_23 {dimension_numbers = #tpu.dot_dimension_numbers<[1], [0], [0], [1], [0, 0, 1, 1], [], []>} : vector<8x32xbf16>, vector<32x128xbf16>, vector<8x128xf32> -> vector<8x128xf32>
    %218 = arith.addf %215, %217 : vector<8x128xf32>
    %219 = arith.negf %218 : vector<8x128xf32>
    %220 = math.exp %219 : vector<8x128xf32>
    %cst_24 = arith.constant 1.000000e+00 : f32
    %221 = vector.broadcast %cst_24 : f32 to vector<8x128xf32>
    %222 = arith.addf %221, %220 : vector<8x128xf32>
    %223 = arith.divf %221, %222 : vector<8x128xf32>
    %224 = math.tanh %218 : vector<8x128xf32>
    %225 = vector.extract_strided_slice %223 {offsets = [0, 0], sizes = [8, 32], strides = [1, 1]} : vector<8x128xf32> to vector<8x32xf32>
    %226 = vector.extract_strided_slice %223 {offsets = [0, 32], sizes = [8, 32], strides = [1, 1]} : vector<8x128xf32> to vector<8x32xf32>
    %227 = vector.extract_strided_slice %224 {offsets = [0, 64], sizes = [8, 32], strides = [1, 1]} : vector<8x128xf32> to vector<8x32xf32>
    %228 = vector.extract_strided_slice %223 {offsets = [0, 96], sizes = [8, 32], strides = [1, 1]} : vector<8x128xf32> to vector<8x32xf32>
    %229 = arith.mulf %226, %213 : vector<8x32xf32>
    %230 = arith.mulf %225, %227 : vector<8x32xf32>
    %231 = arith.addf %229, %230 : vector<8x32xf32>
    %232 = math.tanh %231 : vector<8x32xf32>
    %233 = arith.mulf %228, %232 : vector<8x32xf32>
    %234 = vector.extract_strided_slice %15 {offsets = [7, 0, 0], sizes = [1, 8, 1], strides = [1, 1, 1]} : vector<8x8x1xi1> to vector<1x8x1xi1>
    %235 = vector.shape_cast %234 : vector<1x8x1xi1> to vector<8x1xi1>
    %236 = vector.shape_cast %235 : vector<8x1xi1> to vector<8x1xi1>
    %237 = vector.broadcast %236 : vector<8x1xi1> to vector<8x32xi1>
    %238 = arith.select %237, %233, %210 : vector<8x32xi1>, vector<8x32xf32>
    %239 = arith.truncf %238 : vector<8x32xf32> to vector<8x32xbf16>
    %c0_25 = arith.constant 0 : index
    %c0_26 = arith.constant 0 : index
    %240 = vector.load %arg4[%c0_25, %c0_26] : memref<32x128xbf16, #tpu.memory_space<vmem>>, vector<32x128xbf16>
    %cst_27 = arith.constant dense<0.000000e+00> : vector<8x128xf32>
    %241 = tpu.matmul %239, %240, %cst_27 {dimension_numbers = #tpu.dot_dimension_numbers<[1], [0], [0], [1], [0, 0, 1, 1], [], []>} : vector<8x32xbf16>, vector<32x128xbf16>, vector<8x128xf32> -> vector<8x128xf32>
    %c0_28 = arith.constant 0 : index
    %c0_29 = arith.constant 0 : index
    %242 = vector.load %arg5[%c0_28, %c0_29] : memref<1x128xf32, #tpu.memory_space<vmem>>, vector<1x128xf32>
    %243 = vector.broadcast %242 : vector<1x128xf32> to vector<8x128xf32>
    %244 = arith.addf %241, %243 : vector<8x128xf32>
    %cst_30 = arith.constant dense<0xFF800000> : vector<8xf32>
    %245 = vector.multi_reduction <maximumf>, %244, %cst_30 [1] : vector<8x128xf32> to vector<8xf32>
    %246 = vector.shape_cast %245 : vector<8xf32> to vector<8x1xf32>
    %247 = vector.broadcast %246 : vector<8x1xf32> to vector<8x128xf32>
    %248 = arith.subf %244, %247 : vector<8x128xf32>
    %249 = math.exp %248 : vector<8x128xf32>
    %cst_31 = arith.constant dense<0.000000e+00> : vector<8xf32>
    %250 = vector.multi_reduction <add>, %249, %cst_31 [1] : vector<8x128xf32> to vector<8xf32>
    %251 = vector.shape_cast %250 : vector<8xf32> to vector<8x1xf32>
    %252 = math.log %251 : vector<8x1xf32>
    %253 = vector.broadcast %252 : vector<8x1xf32> to vector<8x128xf32>
    %254 = arith.subf %248, %253 : vector<8x128xf32>
    %c0_32 = arith.constant 0 : index
    %c0_33 = arith.constant 0 : index
    %255 = vector.load %arg6[%c0_32, %c0_33] : memref<8x128xf32, #tpu.memory_space<vmem>>, vector<8x128xf32>
    tpu.vector_store %arg6[%c0_32, %c0_33], %254 {strides = array<i32>} : memref<8x128xf32, #tpu.memory_space<vmem>>, vector<8x128xf32>,
    return
  }
}

</mosaic_0001>

<bundles_post_ra>
// kernel: tpu_custom_call.1
= control target key start
LH: loop header
LB: loop body
LE: loop exit
PB: predicated region body
PF: predicated region fallthrough
CT: control target
= control target key end

     0   :  { %v1188_v2 = vmov 0   ;;  %v1189_v6 = vmov 0.0   ;;  %vm112_vm0 = vcmask 1043456   ;;  %s1473_s0 = inlined_call_operand.vmem [shape: s32[64,1], index: 0, kind: input, shape index: {}]   ;;  %s1474_s1 = inlined_call_operand.vmem [shape: s32[8,1], index: 1, kind: input, shape index: {}]   ;;  %s1475_s2 = inlined_call_operand.vmem [shape: bf16[24,128], index: 2, kind: input, shape index: {}]   ;;  %s1476_s3 = inlined_call_operand.vmem [shape: bf16[32,128], index: 3, kind: input, shape index: {}]   ;;  %s1477_s4 = inlined_call_operand.vmem [shape: bf16[32,128], index: 4, kind: input, shape index: {}]   ;;  %s1478_s5 = inlined_call_operand.vmem [shape: f32[1,128], index: 5, kind: input, shape index: {}]   ;;  %s1479_s6 = inlined_call_operand.hbm [shape: f32[8,128], index: 6, kind: output, shape index: {}]  }
   0x1   :  { %v27_v0 = vld [vmem:[%s1473_s0 + $0x10] sm:$0xff]  ;;  %v25_v1 = vld [vmem:[%s1473_s0] sm:$0xff]  ;;  %1089 = vset.pattern.permute.xlu1 %v1188_v2  ;;  %1088 = vset.pattern.permute.xlu0 %v1188_v2  ;;  %v28_v3 = vld [vmem:[%s1473_s0 + $0x18] sm:$0xff] }
   0x2   :  { %v26_v4 = vld [vmem:[%s1473_s0 + $0x8] sm:$0xff]  ;;  %42 = vperm.xlu1 %1089, %v27_v0   ;;  %36 = vperm.xlu0 %1088, %v25_v1   ;;  %v1246_v5 = vld [vmem:[%s1476_s3] sm:$0xff]  }
   0x3   :  { %1009 = vmatprep.subr.bf16.mxu1 %v1189_v6  ;;  %v1091_v7 = vld [vmem:[%s1475_s2] sm:$0xff]   ;;  %v1256_v8 = vld [vmem:[%s1476_s3 + $0x8] sm:$0xff]  }
   0x4   :  { %1010 = vmatpush3.bf16.msra.mxu1 %v1246_v5  ;;  %997 = vmatprep.subr.bf16.mxu0 %v1091_v7  ;;  %v1093_v9 = vld [vmem:[%s1475_s2 + $0x8] ss:$0 sps:$4 sm:$0xff]  }
   0x5   :  { %1011 = vmatprep.subr.bf16.mxu1 %v1189_v6 }
   0x6   :  { %45 = vperm.xlu1 %1089, %v28_v3   ;;  %39 = vperm.xlu0 %1088, %v26_v4  }
   0x7   :  { %11 = vsyncpa [#allocation3], 0  ;;  %998 = vmatpush3.bf16.msra.mxu0 %v1091_v7  ;;  %v114_v10 = vsel %vm112_vm0, %v1093_v9, 0  ;;  %vm1190_vm1 = vmmov 0   ;;  %v33_v11 = vlaneseq  ;;  %vm99_vm6 = vcmask 195584   ;;  %v1297_v32 = vld [vmem:[%s1474_s1] sm:$0xff] }
   0x8   :  { %1012 = vmatpush3.bf16.msra.mxu1 %v1256_v8  ;;  %1081 = vmatprep.subr.msk.bf16.mxu0 %vm112_vm0, %v1093_v9  ;;  %vm186_vm7 = vcmp.gt.s32.totalorder %v1297_v32, 0  ;;  %s1191_s13 = smov 64   ;;  %s1192_s14 = smov 32   ;;  %vm206_vm9 = vcmask 261120   ;;  %vm187_vm10 = vcmp.gt.s32.totalorder %v1297_v32, 1  ;;  %v29_v58 = vld [vmem:[%s1473_s0 + $0x20] sm:$0xff] }
   0x9   :  { %1013 = vmatprep.mubr.msk.bf16.mxu1 %vm1190_vm1, %v1189_v6  ;;  %1017 = vmatprep.subr.bf16.mxu1 %v1189_v6  ;;  %v1274_v12 = vand.u32 127, %v33_v11  ;;  %v275_v34 = vsel %vm186_vm7, 1, %v1188_v2  ;;  %v354_v57 = vsel %vm187_vm10, 1, %v1188_v2  ;;  %v31_v59 = vld [vmem:[%s1473_s0 + $0x30] sm:$0xff]  ;;  %v30_v11 = vld [vmem:[%s1473_s0 + $0x28] sm:$0xff]  ;;  %vm188_vm0 = vcmp.gt.s32.totalorder %v1297_v32, 2 }
   0xa   :  { %vm191_vm7 = vcmp.gt.s32.totalorder %v1297_v32, 5  ;;  %vm192_vm10 = vcmp.gt.s32.totalorder %v1297_v32, 6 }
   0xb   :  { %1000 = vmatpush3.bf16.msra.mxu0 %v114_v10  ;;  %1014 = vmatmul.mubr.bf16.vlgmr.msra.gmra.mrb[0].mxu1 %v1188_v2 }
   0xc   :  { %1018 = vmatpush3.bf16.msra.mxu1 %v1246_v5  ;;  %1021 = vmatprep.mubr.msk.bf16.mxu1 %vm1190_vm1, %v1189_v6 }
   0xd   :  { %1019 = vmatprep.subr.bf16.mxu1 %v1189_v6  ;;  %1025 = vmatprep.subr.bf16.mxu0 %v1189_v6 }
  0x10   :  { %1020 = vmatpush3.bf16.msra.mxu1 %v1256_v8 }
  0x11   :  { %1033 = vmatprep.subr.bf16.mxu1 %v1189_v6 }
  0x81   :  { %v43_v13 = vpop.permute.xlu1 %42  ;;  %v37_v14 = vpop.permute.xlu0 %36 }
  0x82   :  { %vm61_vm2 = vcmp.eq.s32.totalorder %v43_v13, %v1274_v12  ;;  %vm59_vm3 = vcmp.eq.s32.totalorder %v37_v14, %v1274_v12  ;;  %v32_v13 = vld [vmem:[%s1473_s0 + $0x38] sm:$0xff] }
  0x83   :  { %v931_v17 = vsel %vm61_vm2, 1.0, %v1189_v6  ;;  %v929_v18 = vsel %vm59_vm3, 1.0, %v1189_v6  ;;  %vm189_vm3 = vcmp.gt.s32.totalorder %v1297_v32, 3 }
  0x85   :  { %v46_v15 = vpop.permute.xlu1 %45  ;;  %v40_v16 = vpop.permute.xlu0 %39 }
  0x86   :  { %vm62_vm4 = vcmp.eq.s32.totalorder %v46_v15, %v1274_v12  ;;  %vm60_vm5 = vcmp.eq.s32.totalorder %v40_v16, %v1274_v12 }
  0x87   :  { %v932_v19 = vsel %vm62_vm4, 1.0, %v1189_v6  ;;  %v930_v20 = vsel %vm60_vm5, 1.0, %v1189_v6  ;;  %vm190_vm5 = vcmp.gt.s32.totalorder %v1297_v32, 4 }
  0x88   :  { %v84_v21 = vpack.c.bf16 %v932_v19, %v931_v17  ;;  %v83_v22 = vpack.c.bf16 %v930_v20, %v929_v18 }
  0x8a   :  { %1001 = vmatprep.mubr.msk.bf16.mxu0 %vm99_vm6, %v83_v22 }
  0x8b   :  { %1002 = vmatmul.mubr.msk.bf16.vlgmr.msra.gmra.mrb[0].mxu0 %vm99_vm6, %v84_v21 }
  0x8c   :  { %1026 = vmatpush3.bf16.msra.mxu0 %v1246_v5 }
  0x8d   :  { %1027 = vmatprep.subr.bf16.mxu0 %v1189_v6 }
  0x90   :  { %1028 = vmatpush3.bf16.msra.mxu0 %v1256_v8 }
  0x91   :  { %1041 = vmatprep.subr.bf16.mxu0 %v1189_v6 }
  0xde   :  { %v244_v23 = vpop.f32.mrb[0].mxu1 }
  0xdf   :  { %v1015_v24 = vpop.f32.mrb[1].mxu1 }
  0xe0   :  { %v247_v25 = vpop.f32.mrb[2].mxu1 }
  0xe1   :  { %v1016_v26 = vpop.f32.mrb[3].mxu1 }
 0x15e   :  { %v1290_v27 = vpop.f32.mrb[0].mxu0 }
 0x15f   :  { %v150_v28 = vpop.f32.mrb[1].mxu0 }
 0x160   :  { %v250_v29 = vadd.f32 %v244_v23, %v150_v28  ;;  %v1292_v30 = vpop.f32.mrb[2].mxu0 }
 0x161   :  { %v153_v31 = vpop.f32.mrb[3].mxu0 }
 0x162   :  { %1096 = vtanh.f32 %v250_v29  ;;  %v945_v35 = vmul.f32 -1.442695, %v250_v29 }
 0x164   :  { %1098 = vpow2.f32 %v945_v35 }
 0x16c   :  { %v1097_v33 = vpop.eup %1096 }
 0x16d   :  { %260 = vrot.lane.b32.xlu0 %v1097_v33, %s1191_s13 }
 0x16e   :  { %v1099_v36 = vpop.eup %1098 }
 0x16f   :  { %v254_v37 = vadd.f32 1.0, %v1099_v36 }
 0x171   :  { %277 = vperm.xlu0 %1088, %v275_v34   ;;  %1100 = vrcp.f32 %v254_v37 }
 0x17b   :  { %v1101_v38 = vpop.eup %1100 }
 0x17c   :  { %v258_v41 = vmul.f32 0.0, %v1101_v38 }
 0x1df   :  { %v261_v39 = vpop.permute.xlu0 %260 }
 0x1e0   :  { %v263_v40 = vmul.f32 %v1101_v38, %v261_v39 }
 0x1e2   :  { %265 = vrot.lane.b32.xlu1 %v263_v40, %s1192_s14 }
 0x1f0   :  { %v278_v45 = vpop.permute.xlu0 %277 }
 0x1f1   :  { %vm279_vm8 = vcmp.eq.s32.totalorder %v278_v45, 1 }
 0x254   :  { %v266_v42 = vpop.permute.xlu1 %265 }
 0x255   :  { %v268_v43 = vadd.f32 %v266_v42, %v258_v41  ;;  %v433_v42 = vsel %vm188_vm0, 1, %v1188_v2 }
 0x257   :  { %1102 = vtanh.f32 %v268_v43  ;;  %v1324_v3 = vsel %vm279_vm8, %v268_v43, 0.0 }
 0x261   :  { %v1103_v44 = vpop.eup %1102 }
 0x262   :  { %271 = vrot.lane.b32.xlu1 %v1103_v44, %s1191_s13 }
 0x2d4   :  { %v272_v46 = vpop.permute.xlu1 %271 }
 0x2d5   :  { %v274_v47 = vmul.f32 %v1101_v38, %v272_v46 }
 0x2d7   :  { %v280_v48 = vsel %vm279_vm8, %v274_v47, 0.0 }
 0x2d8   :  { %v282_v49 = vpack.c.bf16 %v280_v48, %v280_v48 }
 0x2da   :  { %284 = vrot.lane.b32.xlu0 %v282_v49, %s1192_s14 }
 0x34c   :  { %v285_v50 = vpop.permute.xlu0 %284 }
 0x34d   :  { %1022 = vmatmul.mubr.msk.bf16.vlgmr.msra.gmra.mrb[4].mxu1 %vm206_vm9, %v285_v50 }
 0x34e   :  { %1034 = vmatpush3.bf16.msra.mxu1 %v1246_v5  ;;  %1037 = vmatprep.mubr.msk.bf16.mxu1 %vm1190_vm1, %v1189_v6 }
 0x34f   :  { %1035 = vmatprep.subr.bf16.mxu1 %v1189_v6 }
 0x352   :  { %1036 = vmatpush3.bf16.msra.mxu1 %v1256_v8 }
 0x353   :  { %1049 = vmatprep.subr.bf16.mxu1 %v1189_v6 }
 0x420   :  { %v323_v51 = vpop.f32.mrb[4].mxu1 }
 0x421   :  { %v329_v52 = vadd.f32 %v323_v51, %v153_v31  ;;  %v1023_v53 = vpop.f32.mrb[5].mxu1 }
 0x422   :  { %v326_v54 = vpop.f32.mrb[6].mxu1 }
 0x423   :  { %1104 = vtanh.f32 %v329_v52  ;;  %v1024_v55 = vpop.f32.mrb[7].mxu1  ;;  %v947_v60 = vmul.f32 -1.442695, %v329_v52 }
 0x425   :  { %1106 = vpow2.f32 %v947_v60 }
 0x42d   :  { %v1105_v56 = vpop.eup %1104 }
 0x42e   :  { %339 = vrot.lane.b32.xlu1 %v1105_v56, %s1191_s13 }
 0x42f   :  { %v1107_v61 = vpop.eup %1106 }
 0x430   :  { %v333_v62 = vadd.f32 1.0, %v1107_v61 }
 0x432   :  { %356 = vperm.xlu1 %1089, %v354_v57   ;;  %1108 = vrcp.f32 %v333_v62 }
 0x436   :  { %48 = vperm.xlu1 %1089, %v29_v58  }
 0x43a   :  { %54 = vperm.xlu1 %1089, %v31_v59  }
 0x43c   :  { %v1109_v63 = vpop.eup %1108 }
 0x43d   :  { %v337_v4 = vmul.f32 %v1109_v63, %v1324_v3 }
 0x4a0   :  { %v340_v0 = vpop.permute.xlu1 %339 }
 0x4a1   :  { %v342_v1 = vmul.f32 %v1109_v63, %v340_v0 }
 0x4a3   :  { %344 = vrot.lane.b32.xlu0 %v342_v1, %s1192_s14  ;;  %v512_v1 = vsel %vm189_vm3, 1, %v1188_v2 }
 0x4b1   :  { %v357_v14 = vpop.permute.xlu1 %356 }
 0x4b2   :  { %vm358_vm11 = vcmp.eq.s32.totalorder %v357_v14, 1 }
 0x4b5   :  { %v49_v19 = vpop.permute.xlu1 %48 }
 0x4b6   :  { %vm63_vm12 = vcmp.eq.s32.totalorder %v49_v19, %v1274_v12 }
 0x4b7   :  { %v933_v22 = vsel %vm63_vm12, 1.0, %v1189_v6 }
 0x4b9   :  { %v55_v20 = vpop.permute.xlu1 %54 }
 0x4ba   :  { %vm65_vm14 = vcmp.eq.s32.totalorder %v55_v20, %v1274_v12 }
 0x4bb   :  { %v935_v26 = vsel %vm65_vm14, 1.0, %v1189_v6 }
 0x515   :  { %v345_v7 = vpop.permute.xlu0 %344 }
 0x516   :  { %v1327_v9 = vadd.f32 %v345_v7, %v337_v4 }
 0x518   :  { %1110 = vtanh.f32 %v1327_v9 }
 0x522   :  { %v1111_v10 = vpop.eup %1110 }
 0x523   :  { %350 = vrot.lane.b32.xlu0 %v1111_v10, %s1191_s13 }
 0x527   :  { %51 = vperm.xlu0 %1088, %v30_v11  }
 0x52b   :  { %57 = vperm.xlu0 %1088, %v32_v13  }
 0x595   :  { %v351_v15 = vpop.permute.xlu0 %350 }
 0x596   :  { %v353_v16 = vmul.f32 %v1109_v63, %v351_v15 }
 0x598   :  { %v1338_v17 = vsel %vm358_vm11, %v353_v16, %v280_v48  ;;  %v360_v48 = vsel %vm358_vm11, %v1327_v9, %v1324_v3  ;;  %vm193_vm11 = vcmp.gt.s32.totalorder %v1297_v32, 7 }
 0x599   :  { %v361_v18 = vpack.c.bf16 %v1338_v17, %v1338_v17 }
 0x59b   :  { %363 = vrot.lane.b32.xlu1 %v361_v18, %s1192_s14 }
 0x5a6   :  { %v52_v21 = vpop.permute.xlu0 %51 }
 0x5a7   :  { %vm64_vm13 = vcmp.eq.s32.totalorder %v52_v21, %v1274_v12 }
 0x5a8   :  { %v934_v23 = vsel %vm64_vm13, 1.0, %v1189_v6 }
 0x5a9   :  { %v85_v24 = vpack.c.bf16 %v934_v23, %v933_v22 }
 0x5aa   :  { %v58_v25 = vpop.permute.xlu0 %57 }
 0x5ab   :  { %vm66_vm15 = vcmp.eq.s32.totalorder %v58_v25, %v1274_v12  ;;  %1005 = vmatprep.mubr.msk.bf16.mxu0 %vm99_vm6, %v85_v24 }
 0x5ac   :  { %v936_v28 = vsel %vm66_vm15, 1.0, %v1189_v6 }
 0x5ad   :  { %v86_v29 = vpack.c.bf16 %v936_v28, %v935_v26 }
 0x5af   :  { %1006 = vmatmul.mubr.msk.bf16.gmra.mrb[4].mxu0 %vm99_vm6, %v86_v29 }
 0x5b0   :  { %1029 = vmatprep.mubr.msk.bf16.mxu0 %vm1190_vm1, %v1189_v6 }
 0x60d   :  { %v364_v31 = vpop.permute.xlu1 %363 }
 0x60e   :  { %1030 = vmatmul.mubr.msk.bf16.vlgmr.msra.gmra.mrb[8].mxu0 %vm206_vm9, %v364_v31  ;;  %v591_v31 = vsel %vm190_vm5, 1, %v1188_v2 }
 0x60f   :  { %1042 = vmatpush3.bf16.msra.mxu0 %v1246_v5  ;;  %1045 = vmatprep.mubr.msk.bf16.mxu0 %vm1190_vm1, %v1189_v6 }
 0x610   :  { %1043 = vmatprep.subr.bf16.mxu0 %v1189_v6 }
 0x613   :  { %1044 = vmatpush3.bf16.msra.mxu0 %v1256_v8 }
 0x614   :  { %1057 = vmatprep.subr.bf16.mxu0 %v1189_v6 }
 0x682   :  { %v1362_v12 = vpop.f32.mrb[4].mxu0 }
 0x683   :  { %v1364_v33 = vpop.f32.mrb[5].mxu0 }
 0x684   :  { %v1366_v34 = vpop.f32.mrb[6].mxu0 }
 0x685   :  { %v1368_v35 = vpop.f32.mrb[7].mxu0 }
 0x6e1   :  { %v402_v36 = vpop.f32.mrb[8].mxu0 }
 0x6e2   :  { %v408_v37 = vadd.f32 %v1290_v27, %v402_v36  ;;  %v1031_v38 = vpop.f32.mrb[9].mxu0 }
 0x6e3   :  { %v405_v39 = vpop.f32.mrb[10].mxu0 }
 0x6e4   :  { %1112 = vtanh.f32 %v408_v37  ;;  %v1032_v40 = vpop.f32.mrb[11].mxu0  ;;  %v949_v43 = vmul.f32 -1.442695, %v408_v37 }
 0x6e6   :  { %1114 = vpow2.f32 %v949_v43 }
 0x6ee   :  { %v1113_v41 = vpop.eup %1112 }
 0x6ef   :  { %418 = vrot.lane.b32.xlu0 %v1113_v41, %s1191_s13 }
 0x6f0   :  { %v1115_v44 = vpop.eup %1114 }
 0x6f1   :  { %v412_v45 = vadd.f32 1.0, %v1115_v44 }
 0x6f3   :  { %435 = vperm.xlu0 %1088, %v433_v42   ;;  %1116 = vrcp.f32 %v412_v45 }
 0x6fd   :  { %v1117_v46 = vpop.eup %1116 }
 0x6fe   :  { %v416_v49 = vmul.f32 %v1117_v46, %v360_v48 }
 0x761   :  { %v419_v47 = vpop.permute.xlu0 %418 }
 0x762   :  { %v421_v27 = vmul.f32 %v1117_v46, %v419_v47 }
 0x764   :  { %423 = vrot.lane.b32.xlu1 %v421_v27, %s1192_s14 }
 0x772   :  { %v436_v53 = vpop.permute.xlu0 %435 }
 0x773   :  { %vm437_vm2 = vcmp.eq.s32.totalorder %v436_v53, 1 }
 0x7d6   :  { %v424_v50 = vpop.permute.xlu1 %423 }
 0x7d7   :  { %v426_v51 = vadd.f32 %v424_v50, %v416_v49 }
 0x7d9   :  { %1118 = vtanh.f32 %v426_v51  ;;  %v439_v11 = vsel %vm437_vm2, %v426_v51, %v360_v48 }
 0x7e3   :  { %v1119_v52 = vpop.eup %1118 }
 0x7e4   :  { %429 = vrot.lane.b32.xlu1 %v1119_v52, %s1191_s13 }
 0x856   :  { %v430_v54 = vpop.permute.xlu1 %429 }
 0x857   :  { %v432_v55 = vmul.f32 %v1117_v46, %v430_v54 }
 0x859   :  { %v438_v56 = vsel %vm437_vm2, %v432_v55, %v1338_v17 }
 0x85a   :  { %v440_v57 = vpack.c.bf16 %v438_v56, %v438_v56 }
 0x85c   :  { %442 = vrot.lane.b32.xlu0 %v440_v57, %s1192_s14 }
 0x8ce   :  { %v443_v58 = vpop.permute.xlu0 %442 }
 0x8cf   :  { %1038 = vmatmul.mubr.msk.bf16.vlgmr.msra.gmra.mrb[8].mxu1 %vm206_vm9, %v443_v58 }
 0x8d0   :  { %1050 = vmatpush3.bf16.msra.mxu1 %v1246_v5  ;;  %1053 = vmatprep.mubr.msk.bf16.mxu1 %vm1190_vm1, %v1189_v6 }
 0x8d1   :  { %1051 = vmatprep.subr.bf16.mxu1 %v1189_v6 }
 0x8d4   :  { %1052 = vmatpush3.bf16.msra.mxu1 %v1256_v8 }
 0x8d5   :  { %1065 = vmatprep.subr.bf16.mxu1 %v1189_v6 }
 0x9a2   :  { %v481_v59 = vpop.f32.mrb[8].mxu1 }
 0x9a3   :  { %v487_v60 = vadd.f32 %v1292_v30, %v481_v59  ;;  %v1039_v61 = vpop.f32.mrb[9].mxu1 }
 0x9a4   :  { %v484_v62 = vpop.f32.mrb[10].mxu1 }
 0x9a5   :  { %1120 = vtanh.f32 %v487_v60  ;;  %v1040_v63 = vpop.f32.mrb[11].mxu1  ;;  %v951_v3 = vmul.f32 -1.442695, %v487_v60 }
 0x9a7   :  { %1122 = vpow2.f32 %v951_v3 }
 0x9af   :  { %v1121_v0 = vpop.eup %1120 }
 0x9b0   :  { %497 = vrot.lane.b32.xlu1 %v1121_v0, %s1191_s13 }
 0x9b1   :  { %v1123_v4 = vpop.eup %1122 }
 0x9b2   :  { %v491_v7 = vadd.f32 1.0, %v1123_v4 }
 0x9b4   :  { %514 = vperm.xlu1 %1089, %v512_v1   ;;  %1124 = vrcp.f32 %v491_v7 }
 0x9be   :  { %v1125_v9 = vpop.eup %1124 }
 0x9bf   :  { %v495_v13 = vmul.f32 %v1125_v9, %v439_v11 }
 0xa22   :  { %v498_v10 = vpop.permute.xlu1 %497 }
 0xa23   :  { %v500_v30 = vmul.f32 %v1125_v9, %v498_v10 }
 0xa25   :  { %502 = vrot.lane.b32.xlu0 %v500_v30, %s1192_s14 }
 0xa33   :  { %v515_v17 = vpop.permute.xlu1 %514 }
 0xa34   :  { %vm516_vm4 = vcmp.eq.s32.totalorder %v515_v17, 1 }
 0xa97   :  { %v503_v14 = vpop.permute.xlu0 %502 }
 0xa98   :  { %v505_v15 = vadd.f32 %v503_v14, %v495_v13 }
 0xa9a   :  { %1126 = vtanh.f32 %v505_v15  ;;  %v518_v41 = vsel %vm516_vm4, %v505_v15, %v439_v11 }
 0xaa4   :  { %v1127_v16 = vpop.eup %1126 }
 0xaa5   :  { %508 = vrot.lane.b32.xlu0 %v1127_v16, %s1191_s13 }
 0xb17   :  { %v509_v18 = vpop.permute.xlu0 %508 }
 0xb18   :  { %v511_v19 = vmul.f32 %v1125_v9, %v509_v18  ;;  %v749_v18 = vsel %vm192_vm10, 1, %v1188_v2 }
 0xb1a   :  { %v517_v20 = vsel %vm516_vm4, %v511_v19, %v438_v56 }
 0xb1b   :  { %v519_v21 = vpack.c.bf16 %v517_v20, %v517_v20 }
 0xb1d   :  { %521 = vrot.lane.b32.xlu1 %v519_v21, %s1192_s14 }
 0xb8f   :  { %v522_v22 = vpop.permute.xlu1 %521 }
 0xb90   :  { %1046 = vmatmul.mubr.msk.bf16.vlgmr.msra.gmra.mrb[12].mxu0 %vm206_vm9, %v522_v22 }
 0xb91   :  { %1058 = vmatpush3.bf16.msra.mxu0 %v1246_v5  ;;  %1061 = vmatprep.mubr.msk.bf16.mxu0 %vm1190_vm1, %v1189_v6 }
 0xb92   :  { %1059 = vmatprep.subr.bf16.mxu0 %v1189_v6 }
 0xb95   :  { %1060 = vmatpush3.bf16.msra.mxu0 %v1256_v8 }
 0xb96   :  { %1073 = vmatprep.subr.bf16.mxu0 %v1189_v6 }
 0xc63   :  { %v560_v23 = vpop.f32.mrb[12].mxu0 }
 0xc64   :  { %v566_v24 = vadd.f32 %v560_v23, %v1364_v33  ;;  %v1047_v25 = vpop.f32.mrb[13].mxu0 }
 0xc65   :  { %v563_v26 = vpop.f32.mrb[14].mxu0 }
 0xc66   :  { %1128 = vtanh.f32 %v566_v24  ;;  %v1048_v28 = vpop.f32.mrb[15].mxu0  ;;  %v953_v36 = vmul.f32 -1.442695, %v566_v24 }
 0xc68   :  { %1130 = vpow2.f32 %v953_v36 }
 0xc70   :  { %v1129_v29 = vpop.eup %1128 }
 0xc71   :  { %576 = vrot.lane.b32.xlu0 %v1129_v29, %s1191_s13 }
 0xc72   :  { %v1131_v37 = vpop.eup %1130 }
 0xc73   :  { %v570_v38 = vadd.f32 1.0, %v1131_v37 }
 0xc75   :  { %593 = vperm.xlu0 %1088, %v591_v31   ;;  %1132 = vrcp.f32 %v570_v38 }
 0xc7f   :  { %v1133_v39 = vpop.eup %1132 }
 0xc80   :  { %v574_v42 = vmul.f32 %v1133_v39, %v518_v41 }
 0xce3   :  { %v577_v40 = vpop.permute.xlu0 %576 }
 0xce4   :  { %v579_v33 = vmul.f32 %v1133_v39, %v577_v40 }
 0xce6   :  { %581 = vrot.lane.b32.xlu1 %v579_v33, %s1192_s14 }
 0xcf4   :  { %v594_v46 = vpop.permute.xlu0 %593 }
 0xcf5   :  { %vm595_vm6 = vcmp.eq.s32.totalorder %v594_v46, 1  ;;  %v828_v46 = vsel %vm193_vm11, 1, %v1188_v2 }
 0xd58   :  { %v582_v43 = vpop.permute.xlu1 %581 }
 0xd59   :  { %v584_v44 = vadd.f32 %v582_v43, %v574_v42 }
 0xd5b   :  { %1134 = vtanh.f32 %v584_v44  ;;  %v597_v61 = vsel %vm595_vm6, %v584_v44, %v518_v41 }
 0xd65   :  { %v1135_v45 = vpop.eup %1134 }
 0xd66   :  { %587 = vrot.lane.b32.xlu1 %v1135_v45, %s1191_s13 }
 0xdd8   :  { %v588_v47 = vpop.permute.xlu1 %587 }
 0xdd9   :  { %v590_v27 = vmul.f32 %v1133_v39, %v588_v47 }
 0xddb   :  { %v596_v48 = vsel %vm595_vm6, %v590_v27, %v517_v20 }
 0xddc   :  { %v598_v49 = vpack.c.bf16 %v596_v48, %v596_v48 }
 0xdde   :  { %600 = vrot.lane.b32.xlu0 %v598_v49, %s1192_s14 }
 0xe50   :  { %v601_v50 = vpop.permute.xlu0 %600 }
 0xe51   :  { %1054 = vmatmul.mubr.msk.bf16.vlgmr.msra.gmra.mrb[12].mxu1 %vm206_vm9, %v601_v50 }
 0xe52   :  { %1066 = vmatpush3.bf16.msra.mxu1 %v1246_v5  ;;  %1069 = vmatprep.mubr.msk.bf16.mxu1 %vm1190_vm1, %v1189_v6  ;;  %v670_v5 = vsel %vm191_vm7, 1, %v1188_v2  ;;  %v1094_v2 = vld [vmem:[%s1477_s4] sm:$0xff]  }
 0xe53   :  { %1067 = vmatprep.subr.bf16.mxu1 %v1189_v6 }
 0xe56   :  { %1068 = vmatpush3.bf16.msra.mxu1 %v1256_v8 }
 0xf24   :  { %v639_v51 = vpop.f32.mrb[12].mxu1 }
 0xf25   :  { %v645_v52 = vadd.f32 %v639_v51, %v1368_v35  ;;  %v1055_v53 = vpop.f32.mrb[13].mxu1 }
 0xf26   :  { %v642_v54 = vpop.f32.mrb[14].mxu1 }
 0xf27   :  { %1136 = vtanh.f32 %v645_v52  ;;  %v1056_v55 = vpop.f32.mrb[15].mxu1  ;;  %v955_v57 = vmul.f32 -1.442695, %v645_v52  ;;  %v1095_v54 = vld [vmem:[%s1477_s4 + $0x8] sm:$0xff]   ;;  %s1193_s4 = smov [#allocation2]  }
 0xf28   :  { %s921_s27 = sshll.u32 %s1193_s4, 4  ;;  %s922_s27 = int_to_ptr.vmem [resolvable:$true] %s921_s27 }
 0xf29   :  { %1138 = vpow2.f32 %v955_v57  ;;  %p1169_p1 = scmp.lt.s32.totalorder %s922_s27, %s922_s27 }
 0xf31   :  { %v1137_v56 = vpop.eup %1136 }
 0xf32   :  { %655 = vrot.lane.b32.xlu1 %v1137_v56, %s1191_s13 }
 0xf33   :  { %v1139_v58 = vpop.eup %1138 }
 0xf34   :  { %v649_v59 = vadd.f32 1.0, %v1139_v58 }
 0xf36   :  { %672 = vperm.xlu1 %1089, %v670_v5   ;;  %1140 = vrcp.f32 %v649_v59 }
 0xf40   :  { %v1141_v8 = vpop.eup %1140 }
 0xf41   :  { %v653_v62 = vmul.f32 %v1141_v8, %v597_v61 }
 0xfa4   :  { %v656_v60 = vpop.permute.xlu1 %655 }
 0xfa5   :  { %v658_v35 = vmul.f32 %v1141_v8, %v656_v60  ;;  %v960_v60 = vld [vmem:[%s1478_s5] ss:$0 sm:$0xff]  ;;  %s1164_s5 = scalar_lea.vmem %s922_s27, 128 }
 0xfa6   :  { %p1165_p0 = scmp.ne.s32.totalorder %s922_s27, %s1164_s5  ;;  %p1170_p2 = scmp.lt.s32.totalorder %s1164_s5, %s1164_s5 }
 0xfa7   :  { %660 = vrot.lane.b32.xlu0 %v658_v35, %s1192_s14 }
 0xfa8   :  { %p1171_p3 = por %p1170_p2, %p1169_p1 }
 0xfaa   :  { %p1172_p4 = pnand %p1171_p3, %p1165_p0 }
 0xfb5   :  { %v673_v3 = vpop.permute.xlu1 %672 }
 0xfb6   :  { %vm674_vm8 = vcmp.eq.s32.totalorder %v673_v3, 1 }
0x1019   :  { %v661_v63 = vpop.permute.xlu0 %660 }
0x101a   :  { %v663_v0 = vadd.f32 %v661_v63, %v653_v62 }
0x101c   :  { %1142 = vtanh.f32 %v663_v0  ;;  %v676_v24 = vsel %vm674_vm8, %v663_v0, %v597_v61 }
0x1026   :  { %v1143_v1 = vpop.eup %1142 }
0x1027   :  { %666 = vrot.lane.b32.xlu0 %v1143_v1, %s1191_s13 }
0x1099   :  { %v667_v4 = vpop.permute.xlu0 %666 }
0x109a   :  { %v669_v7 = vmul.f32 %v1141_v8, %v667_v4 }
0x109c   :  { %v675_v9 = vsel %vm674_vm8, %v669_v7, %v596_v48 }
0x109d   :  { %v677_v10 = vpack.c.bf16 %v675_v9, %v675_v9 }
0x109f   :  { %679 = vrot.lane.b32.xlu1 %v677_v10, %s1192_s14 }
0x1111   :  { %v680_v30 = vpop.permute.xlu1 %679 }
0x1112   :  { %1062 = vmatmul.mubr.msk.bf16.vlgmr.msra.gmra.mrb[16].mxu0 %vm206_vm9, %v680_v30 }
0x1113   :  { %1077 = vmatprep.mubr.msk.bf16.mxu0 %vm1190_vm1, %v1189_v6  ;;  %1074 = vmatpush3.bf16.msra.mxu0 %v1094_v2 }
0x1114   :  { %1075 = vmatprep.subr.bf16.mxu0 %v1189_v6 }
0x1117   :  { %1076 = vmatpush3.bf16.msra.mxu0 %v1095_v54 }
0x11e5   :  { %v718_v11 = vpop.f32.mrb[16].mxu0 }
0x11e6   :  { %v724_v13 = vadd.f32 %v1362_v12, %v718_v11  ;;  %v1063_v14 = vpop.f32.mrb[17].mxu0 }
0x11e7   :  { %v721_v15 = vpop.f32.mrb[18].mxu0 }
0x11e8   :  { %1144 = vtanh.f32 %v724_v13  ;;  %v1064_v16 = vpop.f32.mrb[19].mxu0  ;;  %v957_v19 = vmul.f32 -1.442695, %v724_v13 }
0x11ea   :  { %1146 = vpow2.f32 %v957_v19 }
0x11f2   :  { %v1145_v17 = vpop.eup %1144 }
0x11f3   :  { %734 = vrot.lane.b32.xlu0 %v1145_v17, %s1191_s13 }
0x11f4   :  { %v1147_v20 = vpop.eup %1146 }
0x11f5   :  { %v728_v21 = vadd.f32 1.0, %v1147_v20 }
0x11f7   :  { %751 = vperm.xlu0 %1088, %v749_v18   ;;  %1148 = vrcp.f32 %v728_v21 }
0x1201   :  { %v1149_v22 = vpop.eup %1148 }
0x1202   :  { %v732_v25 = vmul.f32 %v1149_v22, %v676_v24 }
0x1265   :  { %v735_v23 = vpop.permute.xlu0 %734 }
0x1266   :  { %v737_v12 = vmul.f32 %v1149_v22, %v735_v23 }
0x1268   :  { %739 = vrot.lane.b32.xlu1 %v737_v12, %s1192_s14 }
0x1276   :  { %v752_v31 = vpop.permute.xlu0 %751 }
0x1277   :  { %vm753_vm1 = vcmp.eq.s32.totalorder %v752_v31, 1 }
0x12da   :  { %v740_v26 = vpop.permute.xlu1 %739 }
0x12db   :  { %v742_v28 = vadd.f32 %v740_v26, %v732_v25 }
0x12dd   :  { %1150 = vtanh.f32 %v742_v28  ;;  %v755_v51 = vsel %vm753_vm1, %v742_v28, %v676_v24 }
0x12e7   :  { %v1151_v29 = vpop.eup %1150 }
0x12e8   :  { %745 = vrot.lane.b32.xlu1 %v1151_v29, %s1191_s13 }
0x135a   :  { %v746_v36 = vpop.permute.xlu1 %745 }
0x135b   :  { %v748_v37 = vmul.f32 %v1149_v22, %v746_v36 }
0x135d   :  { %v754_v38 = vsel %vm753_vm1, %v748_v37, %v675_v9 }
0x135e   :  { %v756_v39 = vpack.c.bf16 %v754_v38, %v754_v38 }
0x1360   :  { %758 = vrot.lane.b32.xlu0 %v756_v39, %s1192_s14 }
0x13d2   :  { %v759_v40 = vpop.permute.xlu0 %758 }
0x13d3   :  { %1070 = vmatmul.mubr.msk.bf16.vlgmr.msra.gmra.mrb[16].mxu1 %vm206_vm9, %v759_v40 }
0x14a6   :  { %v797_v33 = vpop.f32.mrb[16].mxu1 }
0x14a7   :  { %v803_v41 = vadd.f32 %v1366_v34, %v797_v33  ;;  %v1071_v42 = vpop.f32.mrb[17].mxu1 }
0x14a8   :  { %v800_v43 = vpop.f32.mrb[18].mxu1 }
0x14a9   :  { %1152 = vtanh.f32 %v803_v41  ;;  %v1072_v44 = vpop.f32.mrb[19].mxu1  ;;  %v959_v47 = vmul.f32 -1.442695, %v803_v41 }
0x14ab   :  { %1154 = vpow2.f32 %v959_v47 }
0x14b3   :  { %v1153_v45 = vpop.eup %1152 }
0x14b4   :  { %813 = vrot.lane.b32.xlu1 %v1153_v45, %s1191_s13 }
0x14b5   :  { %v1155_v27 = vpop.eup %1154 }
0x14b6   :  { %v807_v48 = vadd.f32 1.0, %v1155_v27 }
0x14b8   :  { %830 = vperm.xlu1 %1089, %v828_v46   ;;  %1156 = vrcp.f32 %v807_v48 }
0x14c2   :  { %v1157_v49 = vpop.eup %1156 }
0x14c3   :  { %v811_v52 = vmul.f32 %v1157_v49, %v755_v51 }
0x1526   :  { %v814_v50 = vpop.permute.xlu1 %813 }
0x1527   :  { %v816_v34 = vmul.f32 %v1157_v49, %v814_v50 }
0x1529   :  { %818 = vrot.lane.b32.xlu0 %v816_v34, %s1192_s14 }
0x1537   :  { %v831_v56 = vpop.permute.xlu1 %830 }
0x1538   :  { %vm832_vm12 = vcmp.eq.s32.totalorder %v831_v56, 1 }
0x159b   :  { %v819_v32 = vpop.permute.xlu0 %818 }
0x159c   :  { %v821_v53 = vadd.f32 %v819_v32, %v811_v52 }
0x159e   :  { %1158 = vtanh.f32 %v821_v53 }
0x15a8   :  { %v1159_v55 = vpop.eup %1158 }
0x15a9   :  { %824 = vrot.lane.b32.xlu0 %v1159_v55, %s1191_s13 }
0x161b   :  { %v825_v5 = vpop.permute.xlu0 %824 }
0x161c   :  { %v827_v57 = vmul.f32 %v1157_v49, %v825_v5 }
0x161e   :  { %v833_v58 = vsel %vm832_vm12, %v827_v57, %v754_v38 }
0x161f   :  { %v834_v59 = vpack.c.bf16 %v833_v58, %v833_v58 }
0x1621   :  { %847 = vrot.lane.b32.xlu1 %v834_v59, %s1192_s14 }
0x1693   :  { %v848_v8 = vpop.permute.xlu1 %847 }
0x1694   :  { %1078 = vmatmul.mubr.msk.bf16.vlgmr.msra.gmra.mrb[20].mxu0 %vm206_vm9, %v848_v8 }
0x1767   :  { %v898_v6 = vpop.f32.mrb[20].mxu0 }
0x1768   :  { %v899_v35 = vadd.f32 %v960_v60, %v898_v6  ;;  %v1079_v61 = vpop.f32.mrb[21].mxu0 }
0x1769   :  { %v901_v62 = vpop.f32.mrb[22].mxu0 }
0x176a   :  { %904 = vmax.xlane.f32.xlu0 %v899_v35  ;;  %v1080_v63 = vpop.f32.mrb[23].mxu0 }
0x17f7   :  { %v905_v0 = vpop.xlane.xlu0 %904 }
0x17f8   :  { %v906_v1 = vsub.f32 %v899_v35, %v905_v0 }
0x17fa   :  { %v907_v3 = vmul.f32 1.442695, %v906_v1 }
0x17fc   :  { %1160 = vpow2.f32 %v907_v3 }
0x1806   :  { %v1161_v4 = vpop.eup %1160 }
0x1807   :  { %909 = vadd.xlane.f32.xlu1 %v1161_v4 }
0x1894   :  { %v910_v7 = vpop.xlane.xlu1 %909 }
0x1895   :  { %1162 = vlog2.f32 %v910_v7 }
0x189f   :  { %v1163_v9 = vpop.eup %1162 }
0x18a0   :  { %v912_v10 = vmul.f32 0.6931472, %v1163_v9 }
0x18a2   :  { %v913_v30 = vsub.f32 %v906_v1, %v912_v10 }
0x18a4   :  { %914 = vst [vmem:[#allocation2] sm:$0xff] %v913_v30 }
0x18a5   :  { %1175 = shalt.err (!%p1172_p4)
}
0x18a6   :  { %s1176_s30 = scalar_lea.hbm %s1479_s6, 128 }
0x18a7   :  { %p1177_p5 = scmp.ne.s32.totalorder %s1479_s6, %s1176_s30  ;;  %p1180_p6 = scmp.lt.u32.totalorder %s1176_s30, %s1479_s6 }
0x18a9   :  { %p1182_p7 = pnand %p1180_p6, %p1177_p5 }
0x18ab   :  { %1185 = shalt.err (!%p1182_p7)
}
0x18ac   :  { %924 = dma.vmem_to_hbm [thread:$0]  %s922_s27, 128, %s1479_s6, [#allocation3]  }
0x18ad   :  { %1186 = dma.done.wait [#allocation3], 128  }
0x18ae   :  { %1187 = vsyncadd [#allocation3], 4294967168 }
0x18af   :  { %928 = vsyncpa [#allocation3], 1 }

</bundles_post_ra>
